<compile_context>
chip_gen: v7x
topology: tpu7x:2x2x1
jax: 0.10.0
libtpu: 0.0.40
codegen_flags: <defaults>
</compile_context>

<pallas_src>
import functools

import jax
import jax.numpy as jnp
from jax.experimental import pallas as pl
from jax.experimental.pallas import tpu as pltpu


def _patch_merging_kernel(x_ref, we_ref, wo_ref, csum_ref, bias_ref, o_ref, *, eps):
    """Fused 2x2-merge + LayerNorm + (bias-folded) Linear on one tile of rows.

    x_ref    : (th, 2, Wh, 2C)  merged rows; p=0 holds [x0|x2], p=1 holds [x1|x3]
    we_ref   : (2C, out_w)      gamma-scaled weight for the p=0 channels (bf16)
    wo_ref   : (2C, out_w)      gamma-scaled weight for the p=1 channels (bf16)
    csum_ref : (1, out_w)       column sums of the gamma-scaled bf16 weight (f32)
    bias_ref : (1, out_w)       beta @ W.T (f32)
    o_ref    : (th*Wh, out_w)
    """
    th, _, wh, c2 = x_ref.shape
    rows = th * wh

    xe = x_ref[:, 0, :, :]                 # (th, Wh, 2C) == [x0 | x2]
    xo = x_ref[:, 1, :, :]                 # (th, Wh, 2C) == [x1 | x3]
    # Flatten merged rows for the 2-D MXU GEMM (free when Wh % 8 == 0; the
    # output/store side is already 2-D, so no reshape is ever needed there).
    xe = xe.reshape(rows, c2)
    xo = xo.reshape(rows, c2)

    # LayerNorm statistics over all 4C channels, single pass in f32.
    xe_f = xe.astype(jnp.float32)
    xo_f = xo.astype(jnp.float32)
    inv_n = 1.0 / (2.0 * c2)
    s1 = jnp.sum(xe_f, axis=-1, keepdims=True) + jnp.sum(xo_f, axis=-1, keepdims=True)
    s2 = (jnp.sum(xe_f * xe_f, axis=-1, keepdims=True)
          + jnp.sum(xo_f * xo_f, axis=-1, keepdims=True))
    mean = s1 * inv_n
    var = jnp.maximum(s2 * inv_n - mean * mean, 0.0)
    inv_sigma = jax.lax.rsqrt(var + eps)   # (rows, 1)
    shift = mean * inv_sigma               # (rows, 1)

    # GEMM on the raw activations (bf16 in, f32 accumulation); the per-row
    # LayerNorm scale/shift and the folded beta are applied after the matmul:
    #   y = ((x - mean) * inv_sigma * gamma + beta) @ W.T
    #     = (x @ Wg) * inv_sigma - (mean * inv_sigma) * colsum(Wg) + beta @ W.T
    # TODO(synk): for 2C below the MXU native depth the two K=2C dots could be
    # fused into a single K=4C dot; low priority, the kernel is HBM-bound.
    acc = jnp.dot(xe.astype(we_ref.dtype), we_ref[...],
                  preferred_element_type=jnp.float32)
    acc = acc + jnp.dot(xo.astype(wo_ref.dtype), wo_ref[...],
                        preferred_element_type=jnp.float32)
    acc = acc * inv_sigma - shift * csum_ref[...] + bias_ref[...]
    o_ref[...] = acc.astype(o_ref.dtype)


def _vmem_budget_and_limit():
    """Working-set budget for tile sizing and a scoped-VMEM cap, per chip."""
    cap = 128 << 20                                   # v5e / v6e physical VMEM
    try:
        info = pltpu.get_tpu_info()
        cap = int(getattr(info, "vmem_capacity_bytes", cap) or cap)
    except Exception:
        pass                                          # fall back to conservative cap
    budget = min(int(cap * 0.40), 48 << 20)           # ~25 MiB on v7x, 48 MiB on v5e/v6e
    limit_cap = int(cap * 3 // 4)
    return budget, limit_cap


def _pick_row_tile(R, Wh, per_row_bytes, fixed_bytes, budget):
    """Largest divisor of R whose per-step working set fits `budget`.

    Legality: the 2-D output block has th*Wh rows on the sublane axis, which
    must be a multiple of 8 unless the block covers the whole array (th == R).
    For large problems prefer >=4 grid steps (keeps both v7x TensorCores busy
    and the DMA pipeline overlapped); small feature maps stay at 1 step
    (v5e/v6e single core, avoids pointless per-step overhead).
    """
    cands = [d for d in range(1, R + 1)
             if R % d == 0 and ((d * Wh) % 8 == 0 or d == R)]
    fits = [d for d in cands if fixed_bytes + d * per_row_bytes <= budget]
    if not fits:
        return min(cands)
    th = max(fits)
    pref = [d for d in fits if R // d >= 4 and d * Wh >= 1024]
    if pref:
        th = max(pref)
    return th


def patch_merging_forward(x, gamma, beta, weight, *, input_resolution, eps=1e-5,
                          matmul_dtype=jnp.bfloat16):
    """
    x      : (B, H*W, C)
    gamma  : (4*C,)          LayerNorm scale
    beta   : (4*C,)          LayerNorm shift
    weight : (out_dim, 4*C)  nn.Linear weight (bias-free): y = x @ weight.T
    returns: (B, H/2 * W/2, out_dim)
    """
    H, W = input_resolution
    B, L, C = x.shape
    assert L == H * W, "input feature has wrong size"
    assert H % 2 == 0 and W % 2 == 0, f"x size ({H}*{W}) are not even."
    Hh, Wh = H // 2, W // 2
    c2, c4 = 2 * C, 4 * C
    out_dim = weight.shape[0]
    assert weight.shape == (out_dim, c4)
    assert gamma.shape == (c4,) and beta.shape == (c4,)

    # Output lane handling: pad only tiny out_dim (< 128) up to one lane tile;
    # otherwise write out_dim directly (masked tail store beats an extra HBM pass).
    out_w = 128 if out_dim < 128 else out_dim

    # --- parameter-side preprocessing (tiny, done once) ----------------------
    # Kernel channel layout per merged row is [p=0: x0|x2][p=1: x1|x3] while the
    # PyTorch concat order is [x0|x1|x2|x3] -> permute weight blocks [0, 2, 1, 3].
    order = jnp.array([0, 2, 1, 3])
    w_t = weight.T.astype(jnp.float32)                     # (4C, out_dim)
    w_g = w_t * gamma.astype(jnp.float32)[:, None]         # fold gamma
    w_g = w_g.reshape(4, C, out_dim)[order].reshape(c4, out_dim)
    bias = beta.astype(jnp.float32) @ w_t                  # fold beta -> (out_dim,)
    if out_w != out_dim:
        w_g = jnp.pad(w_g, ((0, 0), (0, out_w - out_dim)))
        bias = jnp.pad(bias, (0, out_w - out_dim))
    w_even = w_g[:c2].astype(matmul_dtype)                 # (2C, out_w)
    w_odd = w_g[c2:].astype(matmul_dtype)                  # (2C, out_w)
    # Column sums of the weight actually fed to the MXU (keeps the post-GEMM
    # mean subtraction consistent with the bf16-rounded weight).
    csum = (jnp.sum(w_even.astype(jnp.float32), axis=0)
            + jnp.sum(w_odd.astype(jnp.float32), axis=0)).reshape(1, out_w)
    bias = bias.reshape(1, out_w)

    # --- activation side: pure view, nothing materialized --------------------
    R = B * Hh
    x4 = x.reshape(R, 2, Wh, c2)                           # free reshape

    # --- bytes-based tile sizing ---------------------------------------------
    x_bytes = x.dtype.itemsize
    out_bytes = x.dtype.itemsize
    mm_bytes = jnp.dtype(matmul_dtype).itemsize
    per_row = (2 * (2 * Wh * c2 * x_bytes)        # double-buffered input block
               + 2 * (Wh * out_w * out_bytes)     # double-buffered output block
               + 2 * (2 * Wh * c2 * 4)            # f32 copies + squares temporaries
               + 2 * Wh * c2 * mm_bytes           # bf16 matmul operands
               + 2 * (Wh * out_w * 4))            # f32 accumulator + epilogue temp
    fixed = (2 * 2 * c2 * out_w * mm_bytes        # two weight halves, double buffered
             + 2 * 2 * out_w * 4                  # colsum + bias
             + (2 << 20))                         # compiler scratch slack
    budget, limit_cap = _vmem_budget_and_limit()
    th = _pick_row_tile(R, Wh, per_row, fixed, budget)
    grid = (R // th,)
    vmem_limit = int(min(max(32 << 20, fixed + th * per_row + (8 << 20)), limit_cap))

    out = pl.pallas_call(
        functools.partial(_patch_merging_kernel, eps=eps),
        out_shape=jax.ShapeDtypeStruct((R * Wh, out_w), x.dtype),
        grid_spec=pltpu.PrefetchScalarGridSpec(
            num_scalar_prefetch=0,
            grid=grid,
            in_specs=[
                pl.BlockSpec((th, 2, Wh, c2), lambda i: (i, 0, 0, 0)),   # 2x2 patches
                pl.BlockSpec((c2, out_w), lambda i: (0, 0)),             # W (p=0 half)
                pl.BlockSpec((c2, out_w), lambda i: (0, 0)),             # W (p=1 half)
                pl.BlockSpec((1, out_w), lambda i: (0, 0)),              # colsum(Wg)
                pl.BlockSpec((1, out_w), lambda i: (0, 0)),              # bias
            ],
            out_specs=pl.BlockSpec((th * Wh, out_w), lambda i: (i, 0)),
        ),
        compiler_params=pltpu.CompilerParams(
            dimension_semantics=("parallel",),
            vmem_limit_bytes=vmem_limit,
        ),
    )(x4, w_even, w_odd, csum, bias)

    out = out.reshape(B, Hh * Wh, out_w)
    if out_w != out_dim:
        out = out[..., :out_dim]          # only for tiny out_dim (< 128)
    return out


def _reference(x, gamma, beta, weight, *, input_resolution, eps=1e-5):
    """Pure-JAX f32 reference mirroring the PyTorch module."""
    H, W = input_resolution
    B, L, C = x.shape
    xv = x.reshape(B, H, W, C)
    x0 = xv[:, 0::2, 0::2, :]
    x1 = xv[:, 1::2, 0::2, :]
    x2 = xv[:, 0::2, 1::2, :]
    x3 = xv[:, 1::2, 1::2, :]
    m = jnp.concatenate([x0, x1, x2, x3], -1).reshape(B, -1, 4 * C)
    mu = jnp.mean(m, axis=-1, keepdims=True)
    var = jnp.mean((m - mu) ** 2, axis=-1, keepdims=True)
    mn = (m - mu) / jnp.sqrt(var + eps) * gamma + beta
    return jnp.einsum("blk,ok->blo", mn, weight)


if __name__ == "__main__":
    # module config: input_resolution=(16, 16), dim=32 -> LayerNorm over 4*32=128
    # channels, reduction: Linear(128 -> 64, bias=False), act = Identity.
    B, H, W, C = 2, 16, 16, 32
    out_dim = 2 * C
    key = jax.random.PRNGKey(0)
    kx, kw, kg, kb = jax.random.split(key, 4)

    x = jax.random.normal(kx, (B, H * W, C), dtype=jnp.float32)
    gamma = 1.0 + 0.1 * jax.random.normal(kg, (4 * C,), dtype=jnp.float32)
    beta = 0.1 * jax.random.normal(kb, (4 * C,), dtype=jnp.float32)
    weight = jax.random.normal(kw, (out_dim, 4 * C), dtype=jnp.float32) * 0.02

    y = patch_merging_forward(x, gamma, beta, weight, input_resolution=(H, W))
    y = jax.block_until_ready(y)

    y_ref = _reference(x, gamma, beta, weight, input_resolution=(H, W))
    assert y.shape == (B, (H // 2) * (W // 2), out_dim), y.shape
    # Tolerance reflects bf16 MXU operands (f32 accumulation) vs the f32 reference.
    assert jnp.allclose(y, y_ref, atol=2e-2, rtol=2e-2), "mismatch vs reference"

    print("KERNEL_OK")
</pallas_src>

<mosaic_0001>
module attributes {stable_mosaic.version = 11 : i64} {
  func.func @_patch_merging_kernel(%arg0: i32, %arg1: memref<16x2x8x64xf32, #tpu.memory_space<vmem>>, %arg2: memref<64x128xbf16, #tpu.memory_space<vmem>>, %arg3: memref<64x128xbf16, #tpu.memory_space<vmem>>, %arg4: memref<1x128xf32, #tpu.memory_space<vmem>>, %arg5: memref<1x128xf32, #tpu.memory_space<vmem>>, %arg6: memref<128x128xf32, #tpu.memory_space<vmem>>) attributes {dimension_semantics = [#tpu.dimension_semantics<parallel>], iteration_bounds = array<i64: 1>, scalar_prefetch = 0 : i64, scratch_operands = 0 : i64, tpu.core_type = #tpu.core_type<tc>, window_params = [{transform_indices = @transform_0, window_bounds = array<i64: 16, 2, 8, 64>}, {pipeline_mode = #tpu.pipeline_mode<synchronous>, transform_indices = @transform_1, window_bounds = array<i64: 64, 128>}, {pipeline_mode = #tpu.pipeline_mode<synchronous>, transform_indices = @transform_2, window_bounds = array<i64: 64, 128>}, {pipeline_mode = #tpu.pipeline_mode<synchronous>, transform_indices = @transform_3, window_bounds = array<i64: 1, 128>}, {pipeline_mode = #tpu.pipeline_mode<synchronous>, transform_indices = @transform_4, window_bounds = array<i64: 1, 128>}, {transform_indices = @transform_5, window_bounds = array<i64: 128, 128>}]} {
    %c0 = arith.constant 0 : index
    %c0_0 = arith.constant 0 : index
    %c0_1 = arith.constant 0 : index
    %c0_2 = arith.constant 0 : index
    %0 = vector.load %arg1[%c0, %c0_0, %c0_1, %c0_2] : memref<16x2x8x64xf32, #tpu.memory_space<vmem>>, vector<16x1x8x64xf32>
    %1 = vector.shape_cast %0 : vector<16x1x8x64xf32> to vector<16x8x64xf32>
    %c0_3 = arith.constant 0 : index
    %c1 = arith.constant 1 : index
    %c0_4 = arith.constant 0 : index
    %c0_5 = arith.constant 0 : index
    %2 = vector.load %arg1[%c0_3, %c1, %c0_4, %c0_5] : memref<16x2x8x64xf32, #tpu.memory_space<vmem>>, vector<16x1x8x64xf32>
    %3 = vector.shape_cast %2 : vector<16x1x8x64xf32> to vector<16x8x64xf32>
    %4 = vector.shape_cast %1 : vector<16x8x64xf32> to vector<128x64xf32>
    %5 = vector.shape_cast %3 : vector<16x8x64xf32> to vector<128x64xf32>
    %cst = arith.constant dense<0.000000e+00> : vector<128xf32>
    %6 = vector.multi_reduction <add>, %4, %cst [1] : vector<128x64xf32> to vector<128xf32>
    %7 = vector.shape_cast %6 : vector<128xf32> to vector<128x1xf32>
    %cst_6 = arith.constant dense<0.000000e+00> : vector<128xf32>
    %8 = vector.multi_reduction <add>, %5, %cst_6 [1] : vector<128x64xf32> to vector<128xf32>
    %9 = vector.shape_cast %8 : vector<128xf32> to vector<128x1xf32>
    %10 = arith.addf %7, %9 : vector<128x1xf32>
    %11 = arith.mulf %4, %4 : vector<128x64xf32>
    %cst_7 = arith.constant dense<0.000000e+00> : vector<128xf32>
    %12 = vector.multi_reduction <add>, %11, %cst_7 [1] : vector<128x64xf32> to vector<128xf32>
    %13 = vector.shape_cast %12 : vector<128xf32> to vector<128x1xf32>
    %14 = arith.mulf %5, %5 : vector<128x64xf32>
    %cst_8 = arith.constant dense<0.000000e+00> : vector<128xf32>
    %15 = vector.multi_reduction <add>, %14, %cst_8 [1] : vector<128x64xf32> to vector<128xf32>
    %16 = vector.shape_cast %15 : vector<128xf32> to vector<128x1xf32>
    %17 = arith.addf %13, %16 : vector<128x1xf32>
    %cst_9 = arith.constant 7.812500e-03 : f32
    %18 = vector.broadcast %cst_9 : f32 to vector<128x1xf32>
    %19 = arith.mulf %10, %18 : vector<128x1xf32>
    %cst_10 = arith.constant 7.812500e-03 : f32
    %20 = vector.broadcast %cst_10 : f32 to vector<128x1xf32>
    %21 = arith.mulf %17, %20 : vector<128x1xf32>
    %22 = arith.mulf %19, %19 : vector<128x1xf32>
    %23 = arith.subf %21, %22 : vector<128x1xf32>
    %cst_11 = arith.constant 0.000000e+00 : f32
    %24 = vector.broadcast %cst_11 : f32 to vector<128x1xf32>
    %25 = arith.maximumf %23, %24 : vector<128x1xf32>
    %cst_12 = arith.constant 9.99999974E-6 : f32
    %26 = vector.broadcast %cst_12 : f32 to vector<128x1xf32>
    %27 = arith.addf %25, %26 : vector<128x1xf32>
    %28 = math.rsqrt %27 : vector<128x1xf32>
    %29 = arith.mulf %19, %28 : vector<128x1xf32>
    %30 = arith.truncf %4 : vector<128x64xf32> to vector<128x64xbf16>
    %c0_13 = arith.constant 0 : index
    %c0_14 = arith.constant 0 : index
    %31 = vector.load %arg2[%c0_13, %c0_14] : memref<64x128xbf16, #tpu.memory_space<vmem>>, vector<64x128xbf16>
    %cst_15 = arith.constant dense<0.000000e+00> : vector<128x128xf32>
    %32 = tpu.matmul %30, %31, %cst_15 {dimension_numbers = #tpu.dot_dimension_numbers<[1], [0], [0], [1], [0, 0, 1, 1], [], []>} : vector<128x64xbf16>, vector<64x128xbf16>, vector<128x128xf32> -> vector<128x128xf32>
    %33 = arith.truncf %5 : vector<128x64xf32> to vector<128x64xbf16>
    %c0_16 = arith.constant 0 : index
    %c0_17 = arith.constant 0 : index
    %34 = vector.load %arg3[%c0_16, %c0_17] : memref<64x128xbf16, #tpu.memory_space<vmem>>, vector<64x128xbf16>
    %cst_18 = arith.constant dense<0.000000e+00> : vector<128x128xf32>
    %35 = tpu.matmul %33, %34, %cst_18 {dimension_numbers = #tpu.dot_dimension_numbers<[1], [0], [0], [1], [0, 0, 1, 1], [], []>} : vector<128x64xbf16>, vector<64x128xbf16>, vector<128x128xf32> -> vector<128x128xf32>
    %36 = arith.addf %32, %35 : vector<128x128xf32>
    %37 = vector.broadcast %28 : vector<128x1xf32> to vector<128x128xf32>
    %38 = arith.mulf %36, %37 : vector<128x128xf32>
    %c0_19 = arith.constant 0 : index
    %c0_20 = arith.constant 0 : index
    %39 = vector.load %arg4[%c0_19, %c0_20] : memref<1x128xf32, #tpu.memory_space<vmem>>, vector<1x128xf32>
    %40 = vector.broadcast %29 : vector<128x1xf32> to vector<128x128xf32>
    %41 = vector.broadcast %39 : vector<1x128xf32> to vector<128x128xf32>
    %42 = arith.mulf %40, %41 : vector<128x128xf32>
    %43 = arith.subf %38, %42 : vector<128x128xf32>
    %c0_21 = arith.constant 0 : index
    %c0_22 = arith.constant 0 : index
    %44 = vector.load %arg5[%c0_21, %c0_22] : memref<1x128xf32, #tpu.memory_space<vmem>>, vector<1x128xf32>
    %45 = vector.broadcast %44 : vector<1x128xf32> to vector<128x128xf32>
    %46 = arith.addf %43, %45 : vector<128x128xf32>
    %c0_23 = arith.constant 0 : index
    %c0_24 = arith.constant 0 : index
    %47 = vector.load %arg6[%c0_23, %c0_24] : memref<128x128xf32, #tpu.memory_space<vmem>>, vector<128x128xf32>
    tpu.vector_store %arg6[%c0_23, %c0_24], %46 {strides = array<i32>} : memref<128x128xf32, #tpu.memory_space<vmem>>, vector<128x128xf32>,
    return
  }
  func.func @transform_0(%arg0: i32) -> (i32, i32, i32, i32) {
    %c0_i32 = arith.constant 0 : i32
    %c0_i32_0 = arith.constant 0 : i32
    %c0_i32_1 = arith.constant 0 : i32
    %c0_i32_2 = arith.constant 0 : i32
    return %arg0, %c0_i32, %c0_i32_0, %c0_i32_1 : i32, i32, i32, i32
  }
  func.func @transform_1(%arg0: i32) -> (i32, i32) {
    %c0_i32 = arith.constant 0 : i32
    %c0_i32_0 = arith.constant 0 : i32
    %c0_i32_1 = arith.constant 0 : i32
    return %c0_i32, %c0_i32_0 : i32, i32
  }
  func.func @transform_2(%arg0: i32) -> (i32, i32) {
    %c0_i32 = arith.constant 0 : i32
    %c0_i32_0 = arith.constant 0 : i32
    %c0_i32_1 = arith.constant 0 : i32
    return %c0_i32, %c0_i32_0 : i32, i32
  }
  func.func @transform_3(%arg0: i32) -> (i32, i32) {
    %c0_i32 = arith.constant 0 : i32
    %c0_i32_0 = arith.constant 0 : i32
    %c0_i32_1 = arith.constant 0 : i32
    return %c0_i32, %c0_i32_0 : i32, i32
  }
  func.func @transform_4(%arg0: i32) -> (i32, i32) {
    %c0_i32 = arith.constant 0 : i32
    %c0_i32_0 = arith.constant 0 : i32
    %c0_i32_1 = arith.constant 0 : i32
    return %c0_i32, %c0_i32_0 : i32, i32
  }
  func.func @transform_5(%arg0: i32) -> (i32, i32) {
    %c0_i32 = arith.constant 0 : i32
    %c0_i32_0 = arith.constant 0 : i32
    return %arg0, %c0_i32 : i32, i32
  }
}

</mosaic_0001>

<bundles_post_ra>
// kernel: tpu_custom_call.1
= control target key start
LH: loop header
LB: loop body
LE: loop exit
PB: predicated region body
PF: predicated region fallthrough
CT: control target
= control target key end

     0   :  { %10 = vsyncpa [#allocation3], 0  ;;  %s1858_s0 = inlined_call_operand.hbm [shape: f32[16,2,8,64], index: 0, kind: input, shape index: {}]   ;;  %s1859_s1 = inlined_call_operand.hbm [shape: bf16[64,128], index: 1, kind: input, shape index: {}]   ;;  %s1860_s2 = inlined_call_operand.hbm [shape: bf16[64,128], index: 2, kind: input, shape index: {}]   ;;  %s1861_s3 = inlined_call_operand.vmem [shape: f32[1,128], index: 3, kind: input, shape index: {}]   ;;  %s1862_s4 = inlined_call_operand.vmem [shape: f32[1,128], index: 4, kind: input, shape index: {}]   ;;  %s1863_s5 = inlined_call_operand.hbm [shape: f32[128,128], index: 5, kind: output, shape index: {}]  }
   0x1   :  { %11 = vsyncpa [#allocation6], 0 }
   0x2   :  { %12 = vsyncpa [#allocation4], 0  ;;  %s1171_s18 = smov [#allocation5]   ;;  %s1077_s22 = scalar_lea.hbm %s1859_s1, 512 }
   0x3   :  { %s30_s19 = sshll.u32 %s1171_s18, 4  ;;  %p1078_p0 = scmp.ne.s32.totalorder %s1859_s1, %s1077_s22  ;;  %s31_s19 = int_to_ptr.vmem [resolvable:$true] %s30_s19 }
   0x4   :  { %p1081_p1 = scmp.lt.u32.totalorder %s1077_s22, %s1859_s1 }
   0x6   :  { %p1083_p2 = pnand %p1081_p1, %p1078_p0 }
   0x8   :  { %1086 = shalt.err (!%p1083_p2)
}
   0x9   :  { %s1087_s27 = scalar_lea.vmem %s31_s19, 512  ;;  %p1092_p4 = scmp.lt.s32.totalorder %s31_s19, %s31_s19 }
   0xa   :  { %p1088_p3 = scmp.ne.s32.totalorder %s31_s19, %s1087_s27  ;;  %p1093_p5 = scmp.lt.s32.totalorder %s1087_s27, %s1087_s27 }
   0xc   :  { %p1094_p6 = por %p1093_p5, %p1092_p4 }
   0xe   :  { %p1095_p7 = pnand %p1094_p6, %p1088_p3 }
  0x10   :  { %1098 = shalt.err (!%p1095_p7)
}
  0x11   :  { %s1172_s28 = smov 64   ;;  %s1173_s29 = smov 4  }
  0x12   :  { %36 = dma.hbm_to_vmem [thread:$0]  %s1859_s1, 512, %s31_s19, [#allocation6], %s1172_s28, %s1172_s28, %s1173_s29  }
  0x13   :  { %s1174_s7 = smov [#allocation2]   ;;  %s1099_s11 = scalar_lea.hbm %s1858_s0, 4096 }
  0x14   :  { %s18_s8 = sshll.u32 %s1174_s7, 4  ;;  %p1100_p8 = scmp.ne.s32.totalorder %s1858_s0, %s1099_s11  ;;  %s19_s8 = int_to_ptr.vmem [resolvable:$true] %s18_s8 }
  0x15   :  { %p1103_p9 = scmp.lt.u32.totalorder %s1099_s11, %s1858_s0 }
  0x17   :  { %p1105_p10 = pnand %p1103_p9, %p1100_p8 }
  0x19   :  { %1108 = shalt.err (!%p1105_p10)
}
  0x1a   :  { %s1109_s16 = scalar_lea.vmem %s19_s8, 4096  ;;  %p1114_p12 = scmp.lt.s32.totalorder %s19_s8, %s19_s8 }
  0x1b   :  { %p1110_p11 = scmp.ne.s32.totalorder %s19_s8, %s1109_s16  ;;  %p1115_p13 = scmp.lt.s32.totalorder %s1109_s16, %s1109_s16 }
  0x1d   :  { %p1116_p0 = por %p1115_p13, %p1114_p12 }
  0x1f   :  { %p1117_p1 = pnand %p1116_p0, %p1110_p11 }
  0x21   :  { %1120 = shalt.err (!%p1117_p1)
}
  0x22   :  { %s1175_s1 = smov 128   ;;  %s1176_s17 = smov 8  }
  0x23   :  { %24 = dma.hbm_to_vmem [thread:$0]  %s1858_s0, 4096, %s19_s8, [#allocation3], %s1175_s1, %s1175_s1, %s1176_s17  }
  0x24   :  { %s1177_s20 = smov [#allocation7]   ;;  %s1121_s24 = scalar_lea.hbm %s1860_s2, 512 }
  0x25   :  { %s42_s21 = sshll.u32 %s1177_s20, 4  ;;  %p1122_p2 = scmp.ne.s32.totalorder %s1860_s2, %s1121_s24  ;;  %s43_s21 = int_to_ptr.vmem [resolvable:$true] %s42_s21 }
  0x26   :  { %p1125_p3 = scmp.lt.u32.totalorder %s1121_s24, %s1860_s2 }
  0x28   :  { %p1127_p4 = pnand %p1125_p3, %p1122_p2 }
  0x2a   :  { %1130 = shalt.err (!%p1127_p4)
}
  0x2b   :  { %s1131_s6 = scalar_lea.vmem %s43_s21, 512  ;;  %p1136_p6 = scmp.lt.s32.totalorder %s43_s21, %s43_s21 }
  0x2c   :  { %p1132_p5 = scmp.ne.s32.totalorder %s43_s21, %s1131_s6  ;;  %p1137_p7 = scmp.lt.s32.totalorder %s1131_s6, %s1131_s6 }
  0x2e   :  { %p1138_p8 = por %p1137_p7, %p1136_p6 }
  0x30   :  { %p1139_p9 = pnand %p1138_p8, %p1132_p5 }
  0x32   :  { %1142 = shalt.err (!%p1139_p9)
}
  0x33   :  { %48 = dma.hbm_to_vmem [thread:$0]  %s1860_s2, 512, %s43_s21, [#allocation6], %s1172_s28, %s1172_s28, %s1173_s29  }
  0x34   :  { %1165 = dma.done.wait [#allocation3], 4096  }
  0x35   :  { %1166 = vsyncadd [#allocation3], 4294963200 }
  0x36   :  { %1167 = dma.done.wait [#allocation6], 1024  }
  0x37   :  { %1168 = vsyncadd [#allocation6], 4294966272  ;;  %vm96_vm0 = vcmask 523264   ;;  %v1254_v0 = vld [vmem:[#allocation2 + $0x20] sm:$0xff]  ;;  %v1258_v2 = vld [vmem:[#allocation2 + $0x30] sm:$0xff] }
  0x38   :  { %v1256_v1 = vld [vmem:[#allocation2] sm:$0xff]  ;;  %v103_v3 = vsel %vm96_vm0, %v1254_v0, 0.0  ;;  %v1264_v5 = vld [vmem:[#allocation2 + $0x10] sm:$0xff]  ;;  %v106_v6 = vsel %vm96_vm0, %v1258_v2, 0.0  ;;  %v1039_v17 = vld [vmem:[#allocation7 + $0x8] sm:$0xff]   ;;  %v211_v19 = vmul.f32 %v1254_v0, %v1254_v0  ;;  %v482_v50 = vpack.c.bf16 %v1258_v2, %v1254_v0 }
  0x39   :  { %v97_v4 = vsel %vm96_vm0, %v1256_v1, 0.0  ;;  %104 = vadd.xlane.f32.xlu1 %v103_v3  ;;  %v100_v7 = vsel %vm96_vm0, %v1264_v5, 0.0  ;;  %v1270_v8 = vld [vmem:[#allocation2 + $0x50] sm:$0xff]  ;;  %v1272_v9 = vld [vmem:[#allocation2 + $0x40] sm:$0xff]  ;;  %v481_v12 = vpack.c.bf16 %v1264_v5, %v1256_v1  ;;  %v1040_v18 = vld [vmem:[#allocation5 + $0x8] sm:$0xff]  }
  0x3a   :  { %98 = vadd.xlane.f32.xlu0 %v97_v4  ;;  %v1037_v10 = vld [vmem:[#allocation7] sm:$0xff]   ;;  %v112_v13 = vsel %vm96_vm0, %v1270_v8, 0.0  ;;  %v109_v14 = vsel %vm96_vm0, %v1272_v9, 0.0  ;;  %v1280_v15 = vld [vmem:[#allocation2 + $0x70] sm:$0xff]  ;;  %v1286_v20 = vld [vmem:[#allocation2 + $0x18] sm:$0xff]  ;;  %v1302_v29 = vsel %vm96_vm0, %v211_v19, 0.0  ;;  %v483_v52 = vpack.c.bf16 %v1270_v8, %v1272_v9 }
  0x3b   :  { %v1038_v11 = vld [vmem:[#allocation5] sm:$0xff]   ;;  %965 = vmatprep.subr.bf16.mxu1 %v1037_v10  ;;  %997 = vmatprep.mubr.msk.bf16.mxu0 %vm96_vm0, %v481_v12  ;;  %v118_v21 = vsel %vm96_vm0, %v1280_v15, 0.0  ;;  %v1291_v22 = vld [vmem:[#allocation2 + $0x8] sm:$0xff]  ;;  %v1041_v24 = vld [vmem:[#allocation7 + $0x10] sm:$0xff]   ;;  %v274_v41 = vmul.f32 %v1286_v20, %v1286_v20 }
  0x3c   :  { %v1282_v16 = vld [vmem:[#allocation2 + $0x60] sm:$0xff]  ;;  %989 = vmatprep.subr.bf16.mxu0 %v1038_v11  ;;  %966 = vmatpush3.bf16.msra.mxu1 %v1037_v10  ;;  %v497_v25 = vpack.c.bf16 %v1286_v20, %v1291_v22  ;;  %v1297_v26 = vld [vmem:[#allocation2 + $0x90] sm:$0xff]  ;;  %v1043_v30 = vld [vmem:[#allocation7 + $0x18] sm:$0xff]   ;;  %v273_v42 = vmul.f32 %v1291_v22, %v1291_v22 }
  0x3d   :  { %107 = vadd.xlane.f32.xlu1 %v106_v6  ;;  %990 = vmatpush3.bf16.msra.mxu0 %v1038_v11  ;;  %v115_v23 = vsel %vm96_vm0, %v1282_v16, 0.0  ;;  %v1299_v27 = vld [vmem:[#allocation2 + $0x80] sm:$0xff]  ;;  %v1042_v28 = vld [vmem:[#allocation5 + $0x10] sm:$0xff]   ;;  %v124_v31 = vsel %vm96_vm0, %v1297_v26, 0.0  ;;  %v1044_v34 = vld [vmem:[#allocation5 + $0x18] sm:$0xff]   ;;  %v484_v53 = vpack.c.bf16 %v1280_v15, %v1282_v16  ;;  %v1364_v61 = vsel %vm96_vm0, %v274_v41, 0.0 }
  0x3e   :  { %101 = vadd.xlane.f32.xlu0 %v100_v7  ;;  %967 = vmatprep.subr.bf16.mxu1 %v1039_v17  ;;  %v121_v32 = vsel %vm96_vm0, %v1299_v27, 0.0  ;;  %v1308_v33 = vld [vmem:[#allocation2 + $0xb0] sm:$0xff]  ;;  %v1311_v35 = vld [vmem:[#allocation2 + $0xa0] sm:$0xff]  ;;  %v1319_v39 = vld [vmem:[#allocation2 + $0x38] sm:$0xff]  ;;  %v1367_v62 = vsel %vm96_vm0, %v273_v42, 0.0 }
  0x3f   :  { %991 = vmatprep.subr.bf16.mxu0 %v1040_v18  ;;  %973 = vmatprep.mubr.msk.bf16.mxu1 %vm96_vm0, %v497_v25  ;;  %v1313_v36 = vld [vmem:[#allocation2 + $0xd0] sm:$0xff]  ;;  %v130_v37 = vsel %vm96_vm0, %v1308_v33, 0.0  ;;  %v1317_v38 = vld [vmem:[#allocation2 + $0xc0] sm:$0xff]  ;;  %v1321_v40 = vld [vmem:[#allocation2 + $0x28] sm:$0xff]  ;;  %v127_v43 = vsel %vm96_vm0, %v1311_v35, 0.0  ;;  %v276_v48 = vmul.f32 %v1319_v39, %v1319_v39 }
  0x40   :  { %968 = vmatpush3.bf16.msra.mxu1 %v1039_v17  ;;  %v1329_v44 = vld [vmem:[#allocation2 + $0xf0] sm:$0xff]  ;;  %v498_v45 = vpack.c.bf16 %v1319_v39, %v1321_v40  ;;  %v1333_v46 = vld [vmem:[#allocation2 + $0x58] sm:$0xff]  ;;  %v1335_v47 = vld [vmem:[#allocation2 + $0x48] sm:$0xff]  ;;  %v275_v49 = vmul.f32 %v1321_v40, %v1321_v40  ;;  %v136_v54 = vsel %vm96_vm0, %v1313_v36, 0.0  ;;  %v133_v55 = vsel %vm96_vm0, %v1317_v38, 0.0 }
  0x41   :  { %113 = vadd.xlane.f32.xlu1 %v112_v13  ;;  %992 = vmatpush3.bf16.msra.mxu0 %v1040_v18  ;;  %v499_v51 = vpack.c.bf16 %v1333_v46, %v1335_v47  ;;  %v1353_v56 = vld [vmem:[#allocation2 + $0xe0] sm:$0xff]  ;;  %v1355_v57 = vld [vmem:[#allocation2 + $0x78] sm:$0xff]  ;;  %v1357_v58 = vld [vmem:[#allocation2 + $0x68] sm:$0xff]  ;;  %v142_v59 = vsel %vm96_vm0, %v1329_v44, 0.0  ;;  %v1373_v0 = vsel %vm96_vm0, %v276_v48, 0.0  ;;  %v278_v4 = vmul.f32 %v1333_v46, %v1333_v46 }
  0x42   :  { %110 = vadd.xlane.f32.xlu0 %v109_v14  ;;  %969 = vmatprep.subr.bf16.mxu1 %v1041_v24  ;;  %v500_v60 = vpack.c.bf16 %v1355_v57, %v1357_v58  ;;  %v1370_v63 = vld [vmem:[#allocation2 + $0x98] sm:$0xff]  ;;  %v1376_v3 = vsel %vm96_vm0, %v275_v49, 0.0  ;;  %v277_v6 = vmul.f32 %v1335_v47, %v1335_v47  ;;  %v139_v7 = vsel %vm96_vm0, %v1353_v56, 0.0  ;;  %v1385_v10 = vld [vmem:[#allocation2 + $0x88] sm:$0xff] }
  0x43   :  { %993 = vmatprep.subr.bf16.mxu0 %v1042_v28  ;;  %v1388_v11 = vld [vmem:[#allocation2 + $0xb8] sm:$0xff]  ;;  %v280_v12 = vmul.f32 %v1355_v57, %v1355_v57  ;;  %v279_v13 = vmul.f32 %v1357_v58, %v1357_v58  ;;  %v282_v14 = vmul.f32 %v1370_v63, %v1370_v63  ;;  %v1397_v17 = vld [vmem:[#allocation2 + $0xa8] sm:$0xff]  ;;  %v1400_v18 = vsel %vm96_vm0, %v278_v4, 0.0 }
  0x44   :  { %970 = vmatpush3.bf16.msra.mxu1 %v1041_v24  ;;  %v1403_v19 = vsel %vm96_vm0, %v277_v6, 0.0  ;;  %v1409_v24 = vld [vmem:[#allocation2 + $0xd8] sm:$0xff]  ;;  %v1411_v25 = vld [vmem:[#allocation2 + $0xc8] sm:$0xff]  ;;  %v501_v48 = vpack.c.bf16 %v1370_v63, %v1385_v10 }
  0x45   :  { %119 = vadd.xlane.f32.xlu1 %v118_v21  ;;  %994 = vmatpush3.bf16.msra.mxu0 %v1042_v28  ;;  %v281_v21 = vmul.f32 %v1385_v10, %v1385_v10  ;;  %v1414_v28 = vsel %vm96_vm0, %v280_v12, 0.0  ;;  %v148_v12 = vsel %vm96_vm0, %v1286_v20, 0.0  ;;  %v502_v20 = vpack.c.bf16 %v1388_v11, %v1397_v17 }
  0x46   :  { %116 = vadd.xlane.f32.xlu0 %v115_v23  ;;  %971 = vmatprep.subr.bf16.mxu1 %v1043_v30  ;;  %v284_v23 = vmul.f32 %v1388_v11, %v1388_v11 }
  0x47   :  { %995 = vmatprep.subr.bf16.mxu0 %v1044_v34  ;;  %v1425_v41 = vsel %vm96_vm0, %v281_v21, 0.0  ;;  %v163_v21 = vsel %vm96_vm0, %v1357_v58, 0.0  ;;  %v175_v58 = vsel %vm96_vm0, %v1397_v17, 0.0 }
  0x48   :  { %972 = vmatpush3.bf16.msra.mxu1 %v1043_v30  ;;  %v1417_v30 = vsel %vm96_vm0, %v279_v13, 0.0  ;;  %v1428_v42 = vsel %vm96_vm0, %v284_v23, 0.0  ;;  %v145_v13 = vsel %vm96_vm0, %v1291_v22, 0.0  ;;  %v486_v22 = vpack.c.bf16 %v1308_v33, %v1311_v35 }
  0x49   :  { %125 = vadd.xlane.f32.xlu1 %v124_v31  ;;  %996 = vmatpush3.bf16.msra.mxu0 %v1044_v34  ;;  %v1420_v31 = vsel %vm96_vm0, %v282_v14, 0.0  ;;  %v95_v34 = vld [vmem:[#allocation2 + $0xf8] sm:$0xff]  ;;  %v166_v14 = vsel %vm96_vm0, %v1355_v57, 0.0  ;;  %v172_v23 = vsel %vm96_vm0, %v1370_v63, 0.0  ;;  %v178_v57 = vsel %vm96_vm0, %v1388_v11, 0.0 }
  0x4a   :  { %122 = vadd.xlane.f32.xlu0 %v121_v32  ;;  %v283_v32 = vmul.f32 %v1397_v17, %v1397_v17  ;;  %v184_v63 = vsel %vm96_vm0, %v1409_v24, 0.0  ;;  %v210_v11 = vmul.f32 %v1264_v5, %v1264_v5  ;;  %v209_v17 = vmul.f32 %v1256_v1, %v1256_v1 }
  0x4b   :  { %974 = vmatmul.mubr.msk.bf16.vlgmr.msra.gmra.mrb[0].mxu1 %vm96_vm0, %v498_v45  ;;  %v285_v45 = vmul.f32 %v1411_v25, %v1411_v25  ;;  %v213_v5 = vmul.f32 %v1272_v9, %v1272_v9  ;;  %v218_v9 = vmul.f32 %v1297_v26, %v1297_v26 }
  0x4c   :  { %998 = vmatmul.mubr.msk.bf16.vlgmr.msra.gmra.mrb[0].mxu0 %vm96_vm0, %v482_v50  ;;  %977 = vmatprep.mubr.msk.bf16.mxu1 %vm96_vm0, %v499_v51  ;;  %v1437_v49 = vsel %vm96_vm0, %v283_v32, 0.0  ;;  %v288_v50 = vmul.f32 %v95_v34, %v95_v34  ;;  %v169_v32 = vsel %vm96_vm0, %v1385_v10, 0.0  ;;  %v181_v10 = vsel %vm96_vm0, %v1411_v25, 0.0 }
  0x4d   :  { %131 = vadd.xlane.f32.xlu1 %v130_v37  ;;  %1001 = vmatprep.mubr.msk.bf16.mxu0 %vm96_vm0, %v483_v52  ;;  %v94_v37 = vld [vmem:[#allocation2 + $0xe8] sm:$0xff]  ;;  %v485_v52 = vpack.c.bf16 %v1297_v26, %v1299_v27 }
  0x4e   :  { %128 = vadd.xlane.f32.xlu0 %v127_v43  ;;  %v286_v43 = vmul.f32 %v1409_v24, %v1409_v24  ;;  %v287_v51 = vmul.f32 %v94_v37, %v94_v37  ;;  %v1448_v4 = vsel %vm96_vm0, %v288_v50, 0.0  ;;  %v237_v50 = vsel %vm96_vm0, %v213_v5, 0.0 }
  0x50   :  { %v1451_v6 = vsel %vm96_vm0, %v287_v51, 0.0  ;;  %v215_v51 = vmul.f32 %v1282_v16, %v1282_v16  ;;  %v220_v16 = vmul.f32 %v1308_v33, %v1308_v33 }
  0x51   :  { %137 = vadd.xlane.f32.xlu1 %v136_v54  ;;  %v1442_v54 = vsel %vm96_vm0, %v286_v43, 0.0  ;;  %v190_v43 = vsel %vm96_vm0, %v95_v34, 0.0 }
  0x52   :  { %134 = vadd.xlane.f32.xlu0 %v133_v55  ;;  %v1445_v55 = vsel %vm96_vm0, %v285_v45, 0.0  ;;  %v187_v45 = vsel %vm96_vm0, %v94_v37, 0.0 }
  0x53   :  { %978 = vmatmul.mubr.msk.bf16.gmra.mrb[4].mxu1 %vm96_vm0, %v500_v60  ;;  %v487_v60 = vpack.c.bf16 %v1313_v36, %v1317_v38 }
  0x54   :  { %1002 = vmatmul.mubr.msk.bf16.gmra.mrb[4].mxu0 %vm96_vm0, %v484_v53  ;;  %981 = vmatprep.mubr.msk.bf16.mxu1 %vm96_vm0, %v501_v48  ;;  %v503_v53 = vpack.c.bf16 %v1409_v24, %v1411_v25  ;;  %v228_v48 = vsel %vm96_vm0, %v210_v11, 0.0  ;;  %v225_v24 = vsel %vm96_vm0, %v209_v17, 0.0  ;;  %v212_v25 = vmul.f32 %v1258_v2, %v1258_v2 }
  0x55   :  { %143 = vadd.xlane.f32.xlu1 %v142_v59  ;;  %1005 = vmatprep.mubr.msk.bf16.mxu0 %vm96_vm0, %v485_v52  ;;  %v154_v59 = vsel %vm96_vm0, %v1319_v39, 0.0  ;;  %v160_v39 = vsel %vm96_vm0, %v1333_v46, 0.0  ;;  %v504_v46 = vpack.c.bf16 %v95_v34, %v94_v37  ;;  %v214_v37 = vmul.f32 %v1270_v8, %v1270_v8 }
  0x56   :  { %140 = vadd.xlane.f32.xlu0 %v139_v7  ;;  %v151_v7 = vsel %vm96_vm0, %v1321_v40, 0.0  ;;  %v157_v40 = vsel %vm96_vm0, %v1335_v47, 0.0  ;;  %v488_v47 = vpack.c.bf16 %v1329_v44, %v1353_v56  ;;  %v234_v34 = vsel %vm96_vm0, %v212_v25, 0.0 }
  0x57   :  { %v240_v1 = vsel %vm96_vm0, %v214_v37, 0.0  ;;  %v216_v2 = vmul.f32 %v1280_v15, %v1280_v15  ;;  %v243_v52 = vsel %vm96_vm0, %v215_v51, 0.0 }
  0x59   :  { %149 = vadd.xlane.f32.xlu1 %v148_v12  ;;  %v246_v8 = vsel %vm96_vm0, %v216_v2, 0.0  ;;  %v252_v12 = vsel %vm96_vm0, %v218_v9, 0.0 }
  0x5a   :  { %146 = vadd.xlane.f32.xlu0 %v145_v13  ;;  %v219_v13 = vmul.f32 %v1311_v35, %v1311_v35  ;;  %v224_v35 = vmul.f32 %v1329_v44, %v1329_v44 }
  0x5b   :  { %982 = vmatmul.mubr.msk.bf16.gmra.mrb[8].mxu1 %vm96_vm0, %v502_v20 }
  0x5c   :  { %1006 = vmatmul.mubr.msk.bf16.gmra.mrb[8].mxu0 %vm96_vm0, %v486_v22  ;;  %985 = vmatprep.mubr.msk.bf16.mxu1 %vm96_vm0, %v503_v53  ;;  %v255_v26 = vsel %vm96_vm0, %v219_v13, 0.0  ;;  %v223_v22 = vmul.f32 %v1353_v56, %v1353_v56  ;;  %v270_v53 = vsel %vm96_vm0, %v224_v35, 0.0 }
  0x5d   :  { %155 = vadd.xlane.f32.xlu1 %v154_v59  ;;  %1009 = vmatprep.mubr.msk.bf16.mxu0 %vm96_vm0, %v487_v60  ;;  %v258_v59 = vsel %vm96_vm0, %v220_v16, 0.0 }
  0x5e   :  { %152 = vadd.xlane.f32.xlu0 %v151_v7  ;;  %v221_v7 = vmul.f32 %v1317_v38, %v1317_v38 }
  0x60   :  { %v261_v33 = vsel %vm96_vm0, %v221_v7, 0.0 }
  0x61   :  { %161 = vadd.xlane.f32.xlu1 %v160_v39 }
  0x62   :  { %158 = vadd.xlane.f32.xlu0 %v157_v40 }
  0x63   :  { %986 = vmatmul.mubr.msk.bf16.gmra.mrb[12].mxu1 %vm96_vm0, %v504_v46 }
  0x64   :  { %1010 = vmatmul.mubr.msk.bf16.gmra.mrb[12].mxu0 %vm96_vm0, %v488_v47 }
  0x65   :  { %167 = vadd.xlane.f32.xlu1 %v166_v14 }
  0x66   :  { %164 = vadd.xlane.f32.xlu0 %v163_v21 }
  0x69   :  { %173 = vadd.xlane.f32.xlu1 %v172_v23 }
  0x6a   :  { %170 = vadd.xlane.f32.xlu0 %v169_v32 }
  0x6d   :  { %179 = vadd.xlane.f32.xlu1 %v178_v57 }
  0x6e   :  { %176 = vadd.xlane.f32.xlu0 %v175_v58 }
  0x71   :  { %185 = vadd.xlane.f32.xlu1 %v184_v63 }
  0x72   :  { %182 = vadd.xlane.f32.xlu0 %v181_v10 }
  0x75   :  { %191 = vadd.xlane.f32.xlu1 %v190_v43 }
  0x76   :  { %188 = vadd.xlane.f32.xlu0 %v187_v45 }
  0x79   :  { %229 = vadd.xlane.f32.xlu1 %v228_v48 }
  0x7a   :  { %226 = vadd.xlane.f32.xlu0 %v225_v24 }
  0x7d   :  { %235 = vadd.xlane.f32.xlu1 %v234_v34 }
  0x7e   :  { %232 = vadd.xlane.f32.xlu0 %v1302_v29  ;;  %v217_v29 = vmul.f32 %v1299_v27, %v1299_v27  ;;  %v222_v27 = vmul.f32 %v1313_v36, %v1313_v36  ;;  %v267_v36 = vsel %vm96_vm0, %v223_v22, 0.0 }
  0x80   :  { %v249_v15 = vsel %vm96_vm0, %v217_v29, 0.0  ;;  %v264_v20 = vsel %vm96_vm0, %v222_v27, 0.0 }
  0x81   :  { %241 = vadd.xlane.f32.xlu1 %v240_v1 }
  0x82   :  { %238 = vadd.xlane.f32.xlu0 %v237_v50 }
  0x85   :  { %247 = vadd.xlane.f32.xlu1 %v246_v8 }
  0x86   :  { %244 = vadd.xlane.f32.xlu0 %v243_v52 }
  0x89   :  { %253 = vadd.xlane.f32.xlu1 %v252_v12 }
  0x8a   :  { %250 = vadd.xlane.f32.xlu0 %v249_v15 }
  0x8d   :  { %259 = vadd.xlane.f32.xlu1 %v258_v59 }
  0x8e   :  { %256 = vadd.xlane.f32.xlu0 %v255_v26 }
  0x91   :  { %265 = vadd.xlane.f32.xlu1 %v264_v20 }
  0x92   :  { %262 = vadd.xlane.f32.xlu0 %v261_v33 }
  0x95   :  { %271 = vadd.xlane.f32.xlu1 %v270_v53 }
  0x96   :  { %268 = vadd.xlane.f32.xlu0 %v267_v36 }
  0x99   :  { %293 = vadd.xlane.f32.xlu1 %v1364_v61 }
  0x9a   :  { %290 = vadd.xlane.f32.xlu0 %v1367_v62 }
  0x9d   :  { %299 = vadd.xlane.f32.xlu1 %v1373_v0 }
  0x9e   :  { %296 = vadd.xlane.f32.xlu0 %v1376_v3 }
  0xa1   :  { %305 = vadd.xlane.f32.xlu1 %v1400_v18 }
  0xa2   :  { %302 = vadd.xlane.f32.xlu0 %v1403_v19 }
  0xa5   :  { %311 = vadd.xlane.f32.xlu1 %v1414_v28 }
  0xa6   :  { %308 = vadd.xlane.f32.xlu0 %v1417_v30 }
  0xa9   :  { %317 = vadd.xlane.f32.xlu1 %v1420_v31 }
  0xaa   :  { %314 = vadd.xlane.f32.xlu0 %v1425_v41 }
  0xad   :  { %323 = vadd.xlane.f32.xlu1 %v1428_v42 }
  0xae   :  { %320 = vadd.xlane.f32.xlu0 %v1437_v49 }
  0xb1   :  { %329 = vadd.xlane.f32.xlu1 %v1442_v54 }
  0xb2   :  { %326 = vadd.xlane.f32.xlu0 %v1445_v55 }
  0xb5   :  { %335 = vadd.xlane.f32.xlu1 %v1448_v4 }
  0xb6   :  { %332 = vadd.xlane.f32.xlu0 %v1451_v6 }
  0xc6   :  { %v105_v38 = vpop.xlane.xlu1 %104 }
  0xc7   :  { %v99_v44 = vpop.xlane.xlu0 %98 }
  0xca   :  { %v108_v56 = vpop.xlane.xlu1 %107 }
  0xcb   :  { %v102_v61 = vpop.xlane.xlu0 %101 }
  0xce   :  { %v114_v62 = vpop.xlane.xlu1 %113 }
  0xcf   :  { %v111_v0 = vpop.xlane.xlu0 %110 }
  0xd2   :  { %v120_v3 = vpop.xlane.xlu1 %119 }
  0xd3   :  { %v117_v18 = vpop.xlane.xlu0 %116 }
  0xd6   :  { %v126_v19 = vpop.xlane.xlu1 %125 }
  0xd7   :  { %v123_v28 = vpop.xlane.xlu0 %122 }
  0xda   :  { %v132_v30 = vpop.xlane.xlu1 %131 }
  0xdb   :  { %v129_v31 = vpop.xlane.xlu0 %128 }
  0xde   :  { %v138_v41 = vpop.xlane.xlu1 %137 }
  0xdf   :  { %v135_v42 = vpop.xlane.xlu0 %134 }
  0xe2   :  { %v144_v49 = vpop.xlane.xlu1 %143 }
  0xe3   :  { %v141_v54 = vpop.xlane.xlu0 %140 }
  0xe6   :  { %v150_v55 = vpop.xlane.xlu1 %149 }
  0xe7   :  { %v147_v4 = vpop.xlane.xlu0 %146  ;;  %v194_v16 = vadd.f32 %v150_v55, %v102_v61 }
  0xe8   :  { %v193_v26 = vadd.f32 %v147_v4, %v99_v44 }
  0xe9   :  { %v1601_v33 = vmul.f32 0.0078125, %v194_v16 }
  0xea   :  { %v156_v60 = vpop.xlane.xlu1 %155 }
  0xeb   :  { %v153_v6 = vpop.xlane.xlu0 %152  ;;  %v196_v27 = vadd.f32 %v156_v60, %v108_v56  ;;  %v386_v55 = vmul.f32 %v1601_v33, %v1601_v33 }
  0xec   :  { %v195_v7 = vadd.f32 %v153_v6, %v105_v38 }
  0xee   :  { %v162_v39 = vpop.xlane.xlu1 %161 }
  0xef   :  { %v159_v40 = vpop.xlane.xlu0 %158  ;;  %v198_v14 = vadd.f32 %v162_v39, %v114_v62  ;;  %v1607_v62 = vmul.f32 0.0078125, %v193_v26 }
  0xf0   :  { %v197_v35 = vadd.f32 %v159_v40, %v111_v0 }
  0xf1   :  { %v1615_v0 = vmul.f32 0.0078125, %v198_v14  ;;  %v385_v39 = vmul.f32 %v1607_v62, %v1607_v62 }
  0xf2   :  { %v168_v21 = vpop.xlane.xlu1 %167  ;;  %v1621_v4 = vmul.f32 0.0078125, %v197_v35 }
  0xf3   :  { %v165_v46 = vpop.xlane.xlu0 %164  ;;  %v200_v22 = vadd.f32 %v168_v21, %v120_v3 }
  0xf5   :  { %v1623_v60 = vmul.f32 0.0078125, %v200_v22 }
  0xf6   :  { %v174_v47 = vpop.xlane.xlu1 %173 }
  0xf7   :  { %v171_v23 = vpop.xlane.xlu0 %170  ;;  %v202_v32 = vadd.f32 %v174_v47, %v126_v19  ;;  %v1609_v19 = vmul.f32 0.0078125, %v196_v27 }
  0xf9   :  { %v388_v40 = vmul.f32 %v1609_v19, %v1609_v19 }
  0xfa   :  { %v180_v57 = vpop.xlane.xlu1 %179 }
  0xfb   :  { %v177_v58 = vpop.xlane.xlu0 %176  ;;  %v1565_v63 = vadd.f32 %v180_v57, %v132_v30 }
  0xfc   :  { %v1567_v10 = vadd.f32 %v177_v58, %v129_v31  ;;  %v199_v31 = vadd.f32 %v165_v46, %v117_v18 }
  0xfd   :  { %v1654_v16 = vmul.f32 0.0078125, %v1565_v63 }
  0xfe   :  { %v186_v43 = vpop.xlane.xlu1 %185  ;;  %v1631_v47 = vmul.f32 0.0078125, %v199_v31  ;;  %v1657_v26 = vmul.f32 0.0078125, %v1567_v10 }
  0xff   :  { %v183_v45 = vpop.xlane.xlu0 %182  ;;  %v1569_v11 = vadd.f32 %v186_v43, %v138_v41  ;;  %v201_v41 = vadd.f32 %v171_v23, %v123_v28  ;;  %v1633_v23 = vmul.f32 0.0078125, %v202_v32  ;;  %v1651_v32 = vmul.f32 %v1623_v60, %v1623_v60  ;;  %1866 = vst [vmem:[#allocation12_spill] sm:$0xff] %v1654_v16 }
 0x100   :  { %v1571_v17 = vadd.f32 %v183_v45, %v135_v42  ;;  %v1613_v42 = vmul.f32 0.0078125, %v195_v7  ;;  %v1643_v45 = vmul.f32 %v1615_v0, %v1615_v0  ;;  %1867 = vst [vmem:[#allocation13_spill] sm:$0xff] %v1657_v26 }
 0x101   :  { %v1635_v57 = vmul.f32 0.0078125, %v201_v41  ;;  %v1663_v41 = vmul.f32 %v1631_v47, %v1631_v47  ;;  %v1667_v63 = vmul.f32 %v1633_v23, %v1633_v23 }
 0x102   :  { %v192_v48 = vpop.xlane.xlu1 %191  ;;  %v387_v43 = vmul.f32 %v1613_v42, %v1613_v42 }
 0x103   :  { %v189_v24 = vpop.xlane.xlu0 %188  ;;  %v1573_v25 = vadd.f32 %v192_v48, %v144_v49  ;;  %v1671_v10 = vmul.f32 %v1635_v57, %v1635_v57 }
 0x104   :  { %v1575_v34 = vadd.f32 %v189_v24, %v141_v54 }
 0x106   :  { %v230_v37 = vpop.xlane.xlu1 %229 }
 0x107   :  { %v227_v5 = vpop.xlane.xlu0 %226 }
 0x10a   :  { %v1577_v1 = vpop.xlane.xlu1 %235 }
 0x10b   :  { %v1579_v50 = vpop.xlane.xlu0 %232 }
 0x10e   :  { %v1581_v2 = vpop.xlane.xlu1 %241 }
 0x10f   :  { %v1583_v51 = vpop.xlane.xlu0 %238 }
 0x112   :  { %v1585_v8 = vpop.xlane.xlu1 %247 }
 0x113   :  { %v1587_v52 = vpop.xlane.xlu0 %244 }
 0x116   :  { %v1589_v9 = vpop.xlane.xlu1 %253 }
 0x117   :  { %v1591_v29 = vpop.xlane.xlu0 %250 }
 0x11a   :  { %v1593_v12 = vpop.xlane.xlu1 %259 }
 0x11b   :  { %v1595_v15 = vpop.xlane.xlu0 %256 }
 0x11e   :  { %v1597_v13 = vpop.xlane.xlu1 %265  ;;  %v975_v20 = vpop.f32.mrb[0].mxu1 }
 0x11f   :  { %v1599_v59 = vpop.xlane.xlu0 %262  ;;  %v999_v61 = vpop.f32.mrb[0].mxu0 }
 0x120   :  { %v595_v30 = vpop.f32.mrb[1].mxu1  ;;  %v1611_v44 = vadd.f32 %v999_v61, %v975_v20  ;;  %v740_v38 = vpop.f32.mrb[1].mxu0 }
 0x121   :  { %v976_v56 = vpop.f32.mrb[2].mxu1  ;;  %v1617_v3 = vadd.f32 %v740_v38, %v595_v30  ;;  %v1000_v49 = vpop.f32.mrb[2].mxu0 }
 0x122   :  { %v1603_v53 = vpop.xlane.xlu1 %271  ;;  %v598_v54 = vpop.f32.mrb[3].mxu1  ;;  %v1625_v6 = vadd.f32 %v1000_v49, %v976_v56 }
 0x123   :  { %v1605_v36 = vpop.xlane.xlu0 %268  ;;  %v743_v46 = vpop.f32.mrb[3].mxu0 }
 0x124   :  { %v1637_v58 = vadd.f32 %v743_v46, %v598_v54 }
 0x126   :  { %v294_v18 = vpop.xlane.xlu1 %293 }
 0x127   :  { %v291_v28 = vpop.xlane.xlu0 %290  ;;  %v338_v14 = vadd.f32 %v294_v18, %v230_v37  ;;  %v979_v37 = vpop.f32.mrb[4].mxu1 }
 0x128   :  { %v337_v21 = vadd.f32 %v291_v28, %v227_v5  ;;  %v1647_v5 = vmul.f32 %v1621_v4, %v1621_v4  ;;  %v1003_v30 = vpop.f32.mrb[4].mxu0  ;;  %v611_v31 = vpop.f32.mrb[5].mxu1 }
 0x129   :  { %v370_v48 = vmul.f32 0.0078125, %v338_v14  ;;  %v1673_v38 = vadd.f32 %v1003_v30, %v979_v37  ;;  %v756_v56 = vpop.f32.mrb[5].mxu0  ;;  %v1681_v14 = vmul.f32 %v1657_v26, %v1657_v26 }
 0x12a   :  { %v369_v24 = vmul.f32 0.0078125, %v337_v21  ;;  %v300_v27 = vpop.xlane.xlu1 %299  ;;  %v1004_v18 = vpop.f32.mrb[6].mxu0 }
 0x12b   :  { %v297_v7 = vpop.xlane.xlu0 %296  ;;  %v402_v20 = vsub.f32 %v370_v48, %v386_v55  ;;  %v340_v22 = vadd.f32 %v300_v27, %v1577_v1  ;;  %v980_v1 = vpop.f32.mrb[6].mxu1  ;;  %v1683_v48 = vadd.f32 %v756_v56, %v611_v31 }
 0x12c   :  { %v401_v35 = vsub.f32 %v369_v24, %v385_v39  ;;  %v339_v61 = vadd.f32 %v297_v7, %v1579_v50  ;;  %v614_v28 = vpop.f32.mrb[7].mxu1  ;;  %v1677_v39 = vmul.f32 %v1654_v16, %v1654_v16  ;;  %v1685_v24 = vadd.f32 %v1004_v18, %v980_v1 }
 0x12d   :  { %v418_v49 = vmax.f32 %v402_v20, 0.0  ;;  %v372_v54 = vmul.f32 0.0078125, %v340_v22  ;;  %v1688_v22 = vmul.f32 0.0078125, %v1569_v11  ;;  %v1695_v16 = vmul.f32 0.0078125, %v1571_v17 }
 0x12e   :  { %v417_v50 = vmax.f32 %v401_v35, 0.0  ;;  %v371_v55 = vmul.f32 0.0078125, %v339_v61  ;;  %v306_v21 = vpop.xlane.xlu1 %305  ;;  %v759_v35 = vpop.f32.mrb[7].mxu0 }
 0x12f   :  { %v303_v46 = vpop.xlane.xlu0 %302  ;;  %v434_v37 = vadd.f32 1e-05, %v418_v49  ;;  %v404_v7 = vsub.f32 %v372_v54, %v388_v40  ;;  %v342_v61 = vadd.f32 %v306_v21, %v1581_v2  ;;  %v1692_v26 = vadd.f32 %v759_v35, %v614_v28  ;;  %v983_v1 = vpop.f32.mrb[8].mxu1 }
 0x130   :  { %v433_v27 = vadd.f32 1e-05, %v417_v50  ;;  %v403_v20 = vsub.f32 %v371_v55, %v387_v43  ;;  %v341_v30 = vadd.f32 %v303_v46, %v1583_v51  ;;  %v1698_v40 = vmul.f32 0.0078125, %v1573_v25  ;;  %v1007_v17 = vpop.f32.mrb[8].mxu0  ;;  %v627_v18 = vpop.f32.mrb[9].mxu1 }
 0x131   :  { %1045 = vrsqrt.f32 %v434_v37  ;;  %v420_v31 = vmax.f32 %v404_v7, 0.0  ;;  %v374_v43 = vmul.f32 0.0078125, %v342_v61  ;;  %v1703_v28 = vmul.f32 0.0078125, %v1575_v34  ;;  %v772_v37 = vpop.f32.mrb[9].mxu0 }
 0x132   :  { %v419_v56 = vmax.f32 %v403_v20, 0.0  ;;  %1047 = vrsqrt.f32 %v433_v27  ;;  %v373_v11 = vmul.f32 0.0078125, %v341_v30  ;;  %v312_v49 = vpop.xlane.xlu1 %311  ;;  %v1707_v46 = vadd.f32 %v1007_v17, %v983_v1  ;;  %v984_v27 = vpop.f32.mrb[10].mxu1 }
 0x133   :  { %v309_v50 = vpop.xlane.xlu0 %308  ;;  %v436_v2 = vadd.f32 1e-05, %v420_v31  ;;  %v344_v51 = vadd.f32 %v312_v49, %v1585_v8  ;;  %v406_v21 = vsub.f32 %v374_v43, %v1643_v45  ;;  %v1709_v35 = vadd.f32 %v772_v37, %v627_v18  ;;  %v1008_v8 = vpop.f32.mrb[10].mxu0 }
 0x134   :  { %v435_v54 = vadd.f32 1e-05, %v419_v56  ;;  %v343_v55 = vadd.f32 %v309_v50, %v1587_v52  ;;  %v405_v25 = vsub.f32 %v373_v11, %v1647_v5  ;;  %v630_v52 = vpop.f32.mrb[11].mxu1  ;;  %v1711_v56 = vadd.f32 %v1008_v8, %v984_v27  ;;  %v775_v11 = vpop.f32.mrb[11].mxu0 }
 0x135   :  { %1049 = vrsqrt.f32 %v436_v2  ;;  %v376_v7 = vmul.f32 0.0078125, %v344_v51  ;;  %v422_v61 = vmax.f32 %v406_v21, 0.0  ;;  %v1719_v49 = vmul.f32 %v1688_v22, %v1688_v22  ;;  %v1740_v21 = vld [vmem:[%s1861_s3] ss:$0 sm:$0xff] }
 0x136   :  { %v375_v20 = vmul.f32 0.0078125, %v343_v55  ;;  %1051 = vrsqrt.f32 %v435_v54  ;;  %v421_v30 = vmax.f32 %v405_v25, 0.0  ;;  %v318_v34 = vpop.xlane.xlu1 %317  ;;  %v1721_v54 = vadd.f32 %v775_v11, %v630_v52 }
 0x137   :  { %v315_v31 = vpop.xlane.xlu0 %314  ;;  %v408_v45 = vsub.f32 %v376_v7, %v1651_v32  ;;  %v346_v1 = vadd.f32 %v318_v34, %v1589_v9  ;;  %v438_v50 = vadd.f32 1e-05, %v422_v61  ;;  %v1723_v32 = vpop.f32.mrb[12].mxu1  ;;  %v1727_v9 = vmul.f32 %v1695_v16, %v1695_v16 }
 0x138   :  { %v407_v5 = vsub.f32 %v375_v20, %v1663_v41  ;;  %v345_v43 = vadd.f32 %v315_v31, %v1591_v29  ;;  %v437_v2 = vadd.f32 1e-05, %v421_v30  ;;  %v1731_v29 = vmul.f32 %v1698_v40, %v1698_v40  ;;  %v1743_v52 = vpop.f32.mrb[12].mxu0  ;;  %v1745_v61 = vpop.f32.mrb[13].mxu1 }
 0x139   :  { %v424_v51 = vmax.f32 %v408_v45, 0.0  ;;  %v378_v17 = vmul.f32 0.0078125, %v346_v1  ;;  %v1735_v41 = vmul.f32 %v1703_v28, %v1703_v28  ;;  %1053 = vrsqrt.f32 %v438_v50  ;;  %v1751_v1 = vpop.f32.mrb[13].mxu0 }
 0x13a   :  { %v423_v55 = vmax.f32 %v407_v5, 0.0  ;;  %v377_v18 = vmul.f32 0.0078125, %v345_v43  ;;  %v324_v25 = vpop.xlane.xlu1 %323  ;;  %1055 = vrsqrt.f32 %v437_v2  ;;  %v1753_v43 = vpop.f32.mrb[14].mxu1 }
 0x13b   :  { %v321_v37 = vpop.xlane.xlu0 %320  ;;  %v1046_v27 = vpop.eup %1045  ;;  %v440_v7 = vadd.f32 1e-05, %v424_v51  ;;  %v410_v8 = vsub.f32 %v378_v17, %v1667_v63  ;;  %v348_v5 = vadd.f32 %v324_v25, %v1593_v12 }
 0x13c   :  { %v439_v20 = vadd.f32 1e-05, %v423_v55  ;;  %v1048_v30 = vpop.eup %1047  ;;  %v409_v34 = vsub.f32 %v377_v18, %v1671_v10  ;;  %v466_v31 = vmul.f32 %v1046_v27, %v1601_v33  ;;  %v804_v45 = vmul.f32 %v1046_v27, %v1637_v58  ;;  %v1757_v2 = vpop.f32.mrb[14].mxu0  ;;  %v1765_v18 = vld [vmem:[%s1862_s4] ss:$0 sm:$0xff]  ;;  %s1178_s4 = smov [#allocation8]  }
 0x13d   :  { %1057 = vrsqrt.f32 %v440_v7  ;;  %v426_v11 = vmax.f32 %v410_v8, 0.0  ;;  %v465_v63 = vmul.f32 %v1048_v30, %v1607_v62  ;;  %v803_v50 = vmul.f32 %v1048_v30, %v1617_v3  ;;  %v1759_v51 = vpop.f32.mrb[15].mxu1  ;;  %v1770_v27 = vpop.f32.mrb[15].mxu0  ;;  %s902_s8 = sshll.u32 %s1178_s4, 4  ;;  %s903_s8 = int_to_ptr.vmem [resolvable:$true] %s902_s8 }
 0x13e   :  { %1059 = vrsqrt.f32 %v439_v20  ;;  %v425_v33 = vmax.f32 %v409_v34, 0.0  ;;  %v827_v58 = vmul.f32 %v1740_v21, %v466_v31  ;;  %v380_v10 = vmul.f32 0.0078125, %v348_v5  ;;  %v330_v12 = vpop.xlane.xlu1 %329  ;;  %s1143_s9 = scalar_lea.vmem %s903_s8, 2048  ;;  %p1148_p11 = scmp.lt.s32.totalorder %s903_s8, %s903_s8 }
 0x13f   :  { %v1050_v55 = vpop.eup %1049  ;;  %v442_v17 = vadd.f32 1e-05, %v426_v11  ;;  %v826_v62 = vmul.f32 %v1740_v21, %v465_v63  ;;  %v347_v3 = vadd.f32 %v321_v37, %v1595_v15  ;;  %v350_v25 = vadd.f32 %v330_v12, %v1597_v13  ;;  %v327_v63 = vpop.xlane.xlu0 %326  ;;  %p1144_p10 = scmp.ne.s32.totalorder %s903_s8, %s1143_s9  ;;  %p1149_p12 = scmp.lt.s32.totalorder %s1143_s9, %s1143_s9 }
 0x140   :  { %v1052_v7 = vpop.eup %1051  ;;  %v441_v20 = vadd.f32 1e-05, %v425_v33  ;;  %v468_v8 = vmul.f32 %v1050_v55, %v1609_v19  ;;  %v806_v30 = vmul.f32 %v1050_v55, %v1625_v6  ;;  %v843_v34 = vsub.f32 %v804_v45, %v827_v58 }
 0x141   :  { %1061 = vrsqrt.f32 %v442_v17  ;;  %v467_v31 = vmul.f32 %v1052_v7, %v1613_v42  ;;  %v805_v5 = vmul.f32 %v1052_v7, %v1611_v44  ;;  %v842_v11 = vsub.f32 %v803_v50, %v826_v62  ;;  %p1150_p13 = por %p1149_p12, %p1148_p11 }
 0x142   :  { %1063 = vrsqrt.f32 %v441_v20  ;;  %v829_v15 = vmul.f32 %v1740_v21, %v468_v8  ;;  %v866_v13 = vadd.f32 %v1765_v18, %v843_v34  ;;  %v412_v37 = vsub.f32 %v380_v10, %v1677_v39  ;;  %v336_v33 = vpop.xlane.xlu1 %335 }
 0x143   :  { %v828_v19 = vmul.f32 %v1740_v21, %v467_v31  ;;  %v865_v6 = vadd.f32 %v1765_v18, %v842_v11  ;;  %v379_v45 = vmul.f32 0.0078125, %v347_v3  ;;  %v382_v58 = vmul.f32 0.0078125, %v350_v25  ;;  %v1054_v12 = vpop.eup %1053  ;;  %p1151_p0 = pnand %p1150_p13, %p1144_p10 }
 0x144   :  { %v845_v42 = vsub.f32 %v806_v30, %v829_v15  ;;  %882 = vst [vmem:[#allocation8 + $0x8] sm:$0xff] %v866_v13  ;;  %v428_v44 = vmax.f32 %v412_v37, 0.0  ;;  %v349_v50 = vadd.f32 %v327_v63, %v1599_v59  ;;  %v352_v55 = vadd.f32 %v336_v33, %v1603_v53  ;;  %v1056_v17 = vpop.eup %1055 }
 0x145   :  { %v844_v62 = vsub.f32 %v805_v5, %v828_v19  ;;  %881 = vst [vmem:[#allocation8] sm:$0xff] %v865_v6  ;;  %v411_v39 = vsub.f32 %v379_v45, %v1681_v14  ;;  %v414_v10 = vsub.f32 %v382_v58, %v1719_v49  ;;  %v470_v7 = vmul.f32 %v1054_v12, %v1615_v0  ;;  %v333_v19 = vpop.xlane.xlu0 %332 }
 0x146   :  { %v868_v3 = vadd.f32 %v1765_v18, %v845_v42  ;;  %v444_v25 = vadd.f32 1e-05, %v428_v44  ;;  %v381_v20 = vmul.f32 0.0078125, %v349_v50  ;;  %v469_v8 = vmul.f32 %v1056_v17, %v1621_v4 }
 0x147   :  { %v1058_v30 = vpop.eup %1057  ;;  %v867_v59 = vadd.f32 %v1765_v18, %v844_v62  ;;  %v427_v34 = vmax.f32 %v411_v39, 0.0  ;;  %v430_v53 = vmax.f32 %v414_v10, 0.0  ;;  %v807_v31 = vmul.f32 %v1056_v17, %v1683_v48 }
 0x148   :  { %v1060_v5 = vpop.eup %1059  ;;  %884 = vst [vmem:[#allocation8 + $0x18] sm:$0xff] %v868_v3  ;;  %1065 = vrsqrt.f32 %v444_v25  ;;  %v413_v14 = vsub.f32 %v381_v20, %v1727_v9  ;;  %v830_v0 = vmul.f32 %v1740_v21, %v469_v8  ;;  %v472_v49 = vmul.f32 %v1058_v30, %v1623_v60 }
 0x149   :  { %883 = vst [vmem:[#allocation8 + $0x10] sm:$0xff] %v867_v59  ;;  %v443_v11 = vadd.f32 1e-05, %v427_v34  ;;  %v446_v63 = vadd.f32 1e-05, %v430_v53  ;;  %v471_v4 = vmul.f32 %v1060_v5, %v1631_v47  ;;  %v809_v15 = vmul.f32 %v1060_v5, %v1673_v38 }
 0x14a   :  { %v429_v13 = vmax.f32 %v413_v14, 0.0  ;;  %v846_v37 = vsub.f32 %v807_v31, %v830_v0  ;;  %v810_v48 = vmul.f32 %v1058_v30, %v1685_v24  ;;  %v833_v33 = vmul.f32 %v1740_v21, %v472_v49  ;;  %v1869_v14 = vld [vmem:[#allocation13_spill] sm:$0xff] }
 0x14b   :  { %v1062_v6 = vpop.eup %1061  ;;  %1067 = vrsqrt.f32 %v443_v11  ;;  %v832_v9 = vmul.f32 %v1740_v21, %v471_v4  ;;  %v808_v60 = vmul.f32 %v1054_v12, %v1692_v26  ;;  %v831_v45 = vmul.f32 %v1740_v21, %v470_v7 }
 0x14c   :  { %v1064_v58 = vpop.eup %1063  ;;  %1069 = vrsqrt.f32 %v446_v63  ;;  %v445_v47 = vadd.f32 1e-05, %v429_v13  ;;  %v869_v38 = vadd.f32 %v1765_v18, %v846_v37  ;;  %v849_v42 = vsub.f32 %v810_v48, %v833_v33 }
 0x14d   :  { %v848_v44 = vsub.f32 %v809_v15, %v832_v9  ;;  %v847_v50 = vsub.f32 %v808_v60, %v831_v45  ;;  %v384_v24 = vmul.f32 0.0078125, %v352_v55  ;;  %v351_v17 = vadd.f32 %v333_v19, %v1605_v36 }
 0x14e   :  { %1071 = vrsqrt.f32 %v445_v47  ;;  %885 = vst [vmem:[#allocation8 + $0x20] sm:$0xff] %v869_v38  ;;  %v872_v62 = vadd.f32 %v1765_v18, %v849_v42  ;;  %v473_v39 = vmul.f32 %v1064_v58, %v1635_v57  ;;  %v811_v26 = vmul.f32 %v1064_v58, %v1709_v35 }
 0x14f   :  { %v871_v12 = vadd.f32 %v1765_v18, %v848_v44  ;;  %v870_v10 = vadd.f32 %v1765_v18, %v847_v50  ;;  %v416_v7 = vsub.f32 %v384_v24, %v1731_v29  ;;  %v383_v3 = vmul.f32 0.0078125, %v351_v17 }
 0x150   :  { %888 = vst [vmem:[#allocation8 + $0x38] sm:$0xff] %v872_v62  ;;  %v834_v55 = vmul.f32 %v1740_v21, %v473_v39  ;;  %v474_v36 = vmul.f32 %v1062_v6, %v1633_v23  ;;  %v812_v25 = vmul.f32 %v1062_v6, %v1721_v54  ;;  %v797_v20 = vadd.f32 %v1743_v52, %v1723_v32  ;;  %v1868_v52 = vld [vmem:[#allocation12_spill] sm:$0xff] }
 0x151   :  { %887 = vst [vmem:[#allocation8 + $0x30] sm:$0xff] %v871_v12  ;;  %886 = vst [vmem:[#allocation8 + $0x28] sm:$0xff] %v870_v10  ;;  %v432_v57 = vmax.f32 %v416_v7, 0.0  ;;  %v415_v35 = vsub.f32 %v383_v3, %v1735_v41  ;;  %v789_v8 = vadd.f32 %v1751_v1, %v1745_v61  ;;  %v800_v29 = vadd.f32 %v1757_v2, %v1753_v43 }
 0x152   :  { %v1066_v30 = vpop.eup %1065  ;;  %v850_v59 = vsub.f32 %v811_v26, %v834_v55  ;;  %v835_v23 = vmul.f32 %v1740_v21, %v474_v36  ;;  %v792_v54 = vadd.f32 %v1770_v27, %v1759_v51 }
 0x153   :  { %v448_v34 = vadd.f32 1e-05, %v432_v57  ;;  %v431_v32 = vmax.f32 %v415_v35, 0.0  ;;  %v476_v53 = vmul.f32 %v1066_v30, %v1868_v52  ;;  %v814_v31 = vmul.f32 %v1066_v30, %v1711_v56 }
 0x154   :  { %v873_v41 = vadd.f32 %v1765_v18, %v850_v59  ;;  %v851_v5 = vsub.f32 %v812_v25, %v835_v23 }
 0x155   :  { %v1068_v61 = vpop.eup %1067  ;;  %1073 = vrsqrt.f32 %v448_v34  ;;  %v447_v1 = vadd.f32 1e-05, %v431_v32  ;;  %v837_v43 = vmul.f32 %v1740_v21, %v476_v53 }
 0x156   :  { %v1070_v2 = vpop.eup %1069  ;;  %v475_v0 = vmul.f32 %v1068_v61, %v1869_v14  ;;  %v813_v49 = vmul.f32 %v1068_v61, %v1707_v46  ;;  %889 = vst [vmem:[#allocation8 + $0x40] sm:$0xff] %v873_v41  ;;  %v874_v51 = vadd.f32 %v1765_v18, %v851_v5 }
 0x157   :  { %1075 = vrsqrt.f32 %v447_v1  ;;  %v853_v27 = vsub.f32 %v814_v31, %v837_v43  ;;  %v478_v56 = vmul.f32 %v1070_v2, %v1688_v22  ;;  %v816_v11 = vmul.f32 %v1070_v2, %v792_v54 }
 0x158   :  { %v1072_v63 = vpop.eup %1071  ;;  %v836_v4 = vmul.f32 %v1740_v21, %v475_v0  ;;  %890 = vst [vmem:[#allocation8 + $0x48] sm:$0xff] %v874_v51 }
 0x159   :  { %v876_v15 = vadd.f32 %v1765_v18, %v853_v27  ;;  %v477_v13 = vmul.f32 %v1072_v63, %v1695_v16  ;;  %v815_v37 = vmul.f32 %v1072_v63, %v789_v8  ;;  %v839_v48 = vmul.f32 %v1740_v21, %v478_v56 }
 0x15a   :  { %v852_v46 = vsub.f32 %v813_v49, %v836_v4 }
 0x15b   :  { %892 = vst [vmem:[#allocation8 + $0x58] sm:$0xff] %v876_v15  ;;  %v838_v33 = vmul.f32 %v1740_v21, %v477_v13  ;;  %v855_v19 = vsub.f32 %v816_v11, %v839_v48 }
 0x15c   :  { %v875_v6 = vadd.f32 %v1765_v18, %v852_v46 }
 0x15d   :  { %v854_v22 = vsub.f32 %v815_v37, %v838_v33  ;;  %v878_v9 = vadd.f32 %v1765_v18, %v855_v19 }
 0x15e   :  { %891 = vst [vmem:[#allocation8 + $0x50] sm:$0xff] %v875_v6 }
 0x15f   :  { %v1074_v60 = vpop.eup %1073  ;;  %v877_v45 = vadd.f32 %v1765_v18, %v854_v22  ;;  %894 = vst [vmem:[#allocation8 + $0x68] sm:$0xff] %v878_v9 }
 0x160   :  { %v480_v16 = vmul.f32 %v1074_v60, %v1698_v40  ;;  %v818_v58 = vmul.f32 %v1074_v60, %v800_v29 }
 0x161   :  { %v1076_v47 = vpop.eup %1075  ;;  %893 = vst [vmem:[#allocation8 + $0x60] sm:$0xff] %v877_v45 }
 0x162   :  { %v479_v38 = vmul.f32 %v1076_v47, %v1703_v28  ;;  %v817_v42 = vmul.f32 %v1076_v47, %v797_v20  ;;  %v841_v44 = vmul.f32 %v1740_v21, %v480_v16 }
 0x164   :  { %v840_v50 = vmul.f32 %v1740_v21, %v479_v38  ;;  %v857_v24 = vsub.f32 %v818_v58, %v841_v44 }
 0x166   :  { %v856_v17 = vsub.f32 %v817_v42, %v840_v50  ;;  %v880_v62 = vadd.f32 %v1765_v18, %v857_v24 }
 0x168   :  { %v879_v39 = vadd.f32 %v1765_v18, %v856_v17  ;;  %896 = vst [vmem:[#allocation8 + $0x78] sm:$0xff] %v880_v62 }
 0x16a   :  { %895 = vst [vmem:[#allocation8 + $0x70] sm:$0xff] %v879_v39 }
 0x16b   :  { %1154 = shalt.err (!%p1151_p0)
}
 0x16c   :  { %s1155_s12 = scalar_lea.hbm %s1863_s5, 2048 }
 0x16d   :  { %p1156_p1 = scmp.ne.s32.totalorder %s1863_s5, %s1155_s12  ;;  %p1159_p2 = scmp.lt.u32.totalorder %s1155_s12, %s1863_s5 }
 0x16f   :  { %p1161_p3 = pnand %p1159_p2, %p1156_p1 }
 0x171   :  { %1164 = shalt.err (!%p1161_p3)
}
 0x172   :  { %908 = dma.vmem_to_hbm [thread:$0]  %s903_s8, 2048, %s1863_s5, [#allocation4], %s1175_s1, %s1175_s1, %s1176_s17  }
 0x173   :  { %1169 = dma.done.wait [#allocation4], 2048  }
 0x174   :  { %1170 = vsyncadd [#allocation4], 4294965248 }
 0x175   :  { %912 = vsyncpa [#allocation3], 1 }
 0x176   :  { %913 = vsyncpa [#allocation6], 1 }
 0x177   :  { %914 = vsyncpa [#allocation4], 1 }

</bundles_post_ra>
